<compile_context>
chip_gen: v7x
topology: tpu7x:2x2x1
jax: 0.10.0
libtpu: 0.0.40
codegen_flags: <defaults>
</compile_context>

<pallas_src>
import jax
import jax.numpy as jnp
from jax.experimental import pallas as pl
from jax.experimental.pallas import tpu as pltpu


def _mlp_kernel(x_ref, w1_ref, b1_ref, w2_ref, b2_ref, o_ref):
    # x_ref:  (TB, F)    VMEM, batch tile (streams from HBM)
    # w1_ref: (F, Hp)    VMEM, resident (constant index_map)
    # b1_ref: (1, Hp)    VMEM, resident
    # w2_ref: (Hp, 1)    VMEM, resident (layer-2 weight column, f32)
    # b2_ref: (1,)       SMEM scalar
    # o_ref:  (TB, 1)    caller's dtype
    x = x_ref[...]

    # Layer 1: MXU matmul with f32 accumulation; bias + ReLU on the VPU.
    h = jnp.dot(x, w1_ref[...], preferred_element_type=jnp.float32)     # (TB, Hp)
    h = jnp.maximum(h + b1_ref[...], 0.0)

    # Layer 2 (out_features == 1): second MXU matmul. The MXU has slack (layer 1's
    # K=F is tiny vs. the 128/256-wide array), and this avoids a rotate-tree XLU
    # reduce over every h vreg at large batch tiles.
    z = jnp.dot(h, w2_ref[...], preferred_element_type=jnp.float32) + b2_ref[0]

    # Sigmoid via tanh: a single EUP op, f32-accurate.
    o_ref[...] = (0.5 * (jnp.tanh(0.5 * z) + 1.0)).astype(o_ref.dtype)


def _round_up(n, m):
    return ((n + m - 1) // m) * m


def _tpu_config():
    """(vmem_limit_bytes, tiling_budget_bytes, tensorcores_to_feed) per generation."""
    try:
        kind = jax.devices()[0].device_kind.lower()
    except Exception:
        kind = ""
    if "v5" in kind or "v6" in kind:
        # 128 MiB physical VMEM, 1 TensorCore per chip.
        return 96 * 1024 * 1024, 80 * 1024 * 1024, 1
    if "v7" in kind:
        # 64 MiB physical VMEM per TensorCore, 2 TensorCores per chip.
        return 48 * 1024 * 1024, 40 * 1024 * 1024, 2
    # Unknown / older generation: conservative values known to compile cleanly.
    return 32 * 1024 * 1024, 24 * 1024 * 1024, 1


def _pick_block_b(batch_rows, in_features, hidden, x_bytes, out_bytes, budget):
    """Largest batch tile (multiple of 8, <= 8192) fitting the VMEM tiling budget."""
    f_lanes = _round_up(in_features, 128)        # x tile is lane-padded in VMEM
    # Resident weights: constant-index blocks are still double-buffered by the
    # pipeline machinery, so count them twice (conservative). b1 is sublane-padded
    # to 8 rows, the w2 column is lane-padded to 128.
    weight_bytes = 2 * (in_features * hidden * x_bytes
                        + 8 * hidden * 4
                        + hidden * 128 * 4)
    # Per batch row: double-buffered lane-padded x tile + f32 hidden activation
    # + double-buffered lane-padded output row.
    per_row = 2 * f_lanes * x_bytes + hidden * 4 + 2 * 128 * out_bytes
    avail = budget - weight_bytes
    if avail < 8 * per_row:
        # TODO(synk): K-tiled fallback (grid over F with an f32 accumulator and that
        # axis marked "arbitrary") for weights that exceed the per-core VMEM budget.
        raise ValueError(
            "AnomalyDetectorNet weights do not fit the VMEM-resident-weight "
            f"assumption (need ~{weight_bytes} B of {budget} B budget); a K-tiled "
            "kernel is required for this feature size on this TPU generation.")
    tb = max(8, min(avail // per_row, 8192, batch_rows))
    return int(tb) // 8 * 8


def anomaly_detector_forward(x, w1, b1, w2, b2, *, block_b=None):
    """Forward pass of AnomalyDetectorNet.

    x: (B, F); w1: (F, 2F); b1: (1, 2F); w2: (2F, 1); b2: (1, 1).
    Weights are stored pre-transposed ((in, out)) relative to torch.nn.Linear.
    x is streamed in the dtype it already has in HBM (no wrapper-side cast);
    accumulation, biases and the sigmoid are always f32.
    """
    out_dtype = x.dtype
    B, F = x.shape
    H = w1.shape[1]
    vmem_limit, budget, n_cores = _tpu_config()

    # Pad hidden dim to a multiple of 128 lanes; padded columns have zero weights
    # in both layers so they contribute exactly 0.
    Hp = _round_up(H, 128)
    if Hp != H:
        w1 = jnp.pad(w1, ((0, 0), (0, Hp - H)))
        b1 = jnp.pad(b1, ((0, 0), (0, Hp - H)))
        w2 = jnp.pad(w2, ((0, Hp - H), (0, 0)))
    w1 = w1.astype(x.dtype)                       # match the streamed MXU operand
    b1 = b1.astype(jnp.float32)
    w2_col = w2.reshape(Hp, 1).astype(jnp.float32)
    b2_s = b2.reshape((1,)).astype(jnp.float32)   # scalar -> SMEM

    x_bytes = jnp.dtype(x.dtype).itemsize
    out_bytes = jnp.dtype(out_dtype).itemsize

    # Batch tiling: pad B so every block is (8,128)-legal and divides evenly.
    b_rows = _round_up(B, 8)
    if block_b is None:
        tb = _pick_block_b(b_rows, F, Hp, x_bytes, out_bytes, budget)
        if n_cores > 1:
            # Keep every TensorCore busy: force >= n_cores grid steps when B allows.
            tb = min(tb, _round_up(pl.cdiv(b_rows, n_cores), 8))
    else:
        tb = max(8, _round_up(int(block_b), 8))
    grid_b = pl.cdiv(b_rows, tb)
    b_pad = grid_b * tb
    if b_pad != B:
        x = jnp.pad(x, ((0, b_pad - B), (0, 0)))

    out = pl.pallas_call(
        _mlp_kernel,
        out_shape=jax.ShapeDtypeStruct((b_pad, 1), out_dtype),
        grid=(grid_b,),
        in_specs=[
            pl.BlockSpec((tb, F), lambda i: (i, 0)),              # x: batch-tiled
            pl.BlockSpec((F, Hp), lambda i: (0, 0)),              # w1: VMEM-resident
            pl.BlockSpec((1, Hp), lambda i: (0, 0)),              # b1: VMEM-resident
            pl.BlockSpec((Hp, 1), lambda i: (0, 0)),              # w2 col: VMEM-resident
            pl.BlockSpec(memory_space=pltpu.MemorySpace.SMEM),    # b2: scalar in SMEM
        ],
        # (tb, 1) output accepted knowingly: output bytes are F x smaller than the
        # input stream, so the masked store is off the roofline for this kernel.
        out_specs=pl.BlockSpec((tb, 1), lambda i: (i, 0)),
        compiler_params=pltpu.CompilerParams(
            dimension_semantics=("parallel",),   # lets v7x shard the grid over 2 TCs
            vmem_limit_bytes=vmem_limit,
        ),
    )(x, w1, b1, w2_col, b2_s)

    return out[:B]


def init_params(key, no_of_features):
    """Deterministic init mimicking torch.nn.Linear (uniform +-1/sqrt(fan_in))."""
    f = no_of_features
    h = 2 * f
    k1, k2, k3, k4 = jax.random.split(key, 4)
    bound1 = 1.0 / jnp.sqrt(f)
    bound2 = 1.0 / jnp.sqrt(h)
    # Stored pre-transposed: (in, out) instead of torch's (out, in).
    w1 = jax.random.uniform(k1, (f, h), jnp.float32, -bound1, bound1)
    b1 = jax.random.uniform(k2, (1, h), jnp.float32, -bound1, bound1)
    w2 = jax.random.uniform(k3, (h, 1), jnp.float32, -bound2, bound2)
    b2 = jax.random.uniform(k4, (1, 1), jnp.float32, -bound2, bound2)
    return w1, b1, w2, b2


def reference_forward(x, w1, b1, w2, b2):
    h = jnp.maximum(x @ w1 + b1, 0.0)
    return jax.nn.sigmoid(h @ w2 + b2)


if __name__ == "__main__":
    no_of_features = 32

    key = jax.random.PRNGKey(0)
    kx, kx2, kp = jax.random.split(key, 3)
    w1, b1, w2, b2 = init_params(kp, no_of_features)

    # Run 1: small batch, automatic (generation-aware) tile selection.
    batch = 8
    x = jax.random.normal(kx, (batch, no_of_features), dtype=jnp.float32)
    out = jax.block_until_ready(anomaly_detector_forward(x, w1, b1, w2, b2))
    ref = reference_forward(x, w1, b1, w2, b2)
    assert out.shape == (batch, 1)
    assert jnp.allclose(out, ref, atol=2e-3), float(jnp.max(jnp.abs(out - ref)))

    # Run 2: non-multiple batch with a forced small tile -> exercises batch padding
    # and a multi-step ("parallel") grid at small shapes.
    batch2 = 20
    x2 = jax.random.normal(kx2, (batch2, no_of_features), dtype=jnp.float32)
    out2 = jax.block_until_ready(
        anomaly_detector_forward(x2, w1, b1, w2, b2, block_b=8))
    ref2 = reference_forward(x2, w1, b1, w2, b2)
    assert out2.shape == (batch2, 1)
    assert jnp.allclose(out2, ref2, atol=2e-3), float(jnp.max(jnp.abs(out2 - ref2)))

    print("KERNEL_OK")
</pallas_src>

<mosaic_0001>
module attributes {stable_mosaic.version = 11 : i64} {
  func.func @_mlp_kernel(%arg0: i32, %arg1: memref<8x32xf32, #tpu.memory_space<vmem>>, %arg2: memref<32x128xf32, #tpu.memory_space<vmem>>, %arg3: memref<1x128xf32, #tpu.memory_space<vmem>>, %arg4: memref<128x1xf32, #tpu.memory_space<vmem>>, %arg5: memref<1xf32, #tpu.memory_space<smem>>, %arg6: memref<8x1xf32, #tpu.memory_space<vmem>>) attributes {dimension_semantics = [#tpu.dimension_semantics<parallel>], iteration_bounds = array<i64: 1>, scalar_prefetch = 0 : i64, scratch_operands = 0 : i64, tpu.core_type = #tpu.core_type<tc>, window_params = [{transform_indices = @transform_0, window_bounds = array<i64: 8, 32>}, {pipeline_mode = #tpu.pipeline_mode<synchronous>, transform_indices = @transform_1, window_bounds = array<i64: 32, 128>}, {pipeline_mode = #tpu.pipeline_mode<synchronous>, transform_indices = @transform_2, window_bounds = array<i64: 1, 128>}, {pipeline_mode = #tpu.pipeline_mode<synchronous>, transform_indices = @transform_3, window_bounds = array<i64: 128, 1>}, {transform_indices = @transform_4, window_bounds = array<i64: 1>}, {transform_indices = @transform_5, window_bounds = array<i64: 8, 1>}]} {
    %c0 = arith.constant 0 : index
    %c0_0 = arith.constant 0 : index
    %0 = vector.load %arg1[%c0, %c0_0] : memref<8x32xf32, #tpu.memory_space<vmem>>, vector<8x32xf32>
    %c0_1 = arith.constant 0 : index
    %c0_2 = arith.constant 0 : index
    %1 = vector.load %arg2[%c0_1, %c0_2] : memref<32x128xf32, #tpu.memory_space<vmem>>, vector<32x128xf32>
    %cst = arith.constant dense<0.000000e+00> : vector<8x128xf32>
    %2 = tpu.matmul %0, %1, %cst {dimension_numbers = #tpu.dot_dimension_numbers<[1], [0], [0], [1], [0, 0, 1, 1], [], []>} : vector<8x32xf32>, vector<32x128xf32>, vector<8x128xf32> -> vector<8x128xf32>
    %c0_3 = arith.constant 0 : index
    %c0_4 = arith.constant 0 : index
    %3 = vector.load %arg3[%c0_3, %c0_4] : memref<1x128xf32, #tpu.memory_space<vmem>>, vector<1x128xf32>
    %4 = vector.broadcast %3 : vector<1x128xf32> to vector<8x128xf32>
    %5 = arith.addf %2, %4 : vector<8x128xf32>
    %cst_5 = arith.constant 0.000000e+00 : f32
    %6 = vector.broadcast %cst_5 : f32 to vector<8x128xf32>
    %7 = arith.maximumf %5, %6 : vector<8x128xf32>
    %c0_6 = arith.constant 0 : index
    %c0_7 = arith.constant 0 : index
    %8 = vector.load %arg4[%c0_6, %c0_7] : memref<128x1xf32, #tpu.memory_space<vmem>>, vector<128x1xf32>
    %cst_8 = arith.constant dense<0.000000e+00> : vector<8x1xf32>
    %9 = tpu.matmul %7, %8, %cst_8 {dimension_numbers = #tpu.dot_dimension_numbers<[1], [0], [0], [1], [0, 0, 1, 1], [], []>} : vector<8x128xf32>, vector<128x1xf32>, vector<8x1xf32> -> vector<8x1xf32>
    %c0_9 = arith.constant 0 : index
    %10 = memref.load %arg5[%c0_9] : memref<1xf32, #tpu.memory_space<smem>>
    %11 = vector.broadcast %10 : f32 to vector<8x1xf32>
    %12 = arith.addf %9, %11 : vector<8x1xf32>
    %cst_10 = arith.constant 5.000000e-01 : f32
    %13 = vector.broadcast %cst_10 : f32 to vector<8x1xf32>
    %14 = arith.mulf %13, %12 : vector<8x1xf32>
    %15 = math.tanh %14 : vector<8x1xf32>
    %cst_11 = arith.constant 1.000000e+00 : f32
    %16 = vector.broadcast %cst_11 : f32 to vector<8x1xf32>
    %17 = arith.addf %15, %16 : vector<8x1xf32>
    %cst_12 = arith.constant 5.000000e-01 : f32
    %18 = vector.broadcast %cst_12 : f32 to vector<8x1xf32>
    %19 = arith.mulf %18, %17 : vector<8x1xf32>
    %c0_13 = arith.constant 0 : index
    %c0_14 = arith.constant 0 : index
    %20 = vector.load %arg6[%c0_13, %c0_14] : memref<8x1xf32, #tpu.memory_space<vmem>>, vector<8x1xf32>
    tpu.vector_store %arg6[%c0_13, %c0_14], %19 {strides = array<i32>} : memref<8x1xf32, #tpu.memory_space<vmem>>, vector<8x1xf32>,
    return
  }
  func.func @transform_0(%arg0: i32) -> (i32, i32) {
    %c0_i32 = arith.constant 0 : i32
    %c0_i32_0 = arith.constant 0 : i32
    return %arg0, %c0_i32 : i32, i32
  }
  func.func @transform_1(%arg0: i32) -> (i32, i32) {
    %c0_i32 = arith.constant 0 : i32
    %c0_i32_0 = arith.constant 0 : i32
    %c0_i32_1 = arith.constant 0 : i32
    return %c0_i32, %c0_i32_0 : i32, i32
  }
  func.func @transform_2(%arg0: i32) -> (i32, i32) {
    %c0_i32 = arith.constant 0 : i32
    %c0_i32_0 = arith.constant 0 : i32
    %c0_i32_1 = arith.constant 0 : i32
    return %c0_i32, %c0_i32_0 : i32, i32
  }
  func.func @transform_3(%arg0: i32) -> (i32, i32) {
    %c0_i32 = arith.constant 0 : i32
    %c0_i32_0 = arith.constant 0 : i32
    %c0_i32_1 = arith.constant 0 : i32
    return %c0_i32, %c0_i32_0 : i32, i32
  }
  func.func @transform_4(%arg0: i32) -> i32 {
    %c0_i32 = arith.constant 0 : i32
    %c0_i32_0 = arith.constant 0 : i32
    return %c0_i32 : i32
  }
  func.func @transform_5(%arg0: i32) -> (i32, i32) {
    %c0_i32 = arith.constant 0 : i32
    %c0_i32_0 = arith.constant 0 : i32
    return %arg0, %c0_i32 : i32, i32
  }
}

</mosaic_0001>

<bundles_post_ra>
// kernel: tpu_custom_call.1
= control target key start
LH: loop header
LB: loop body
LE: loop exit
PB: predicated region body
PF: predicated region fallthrough
CT: control target
= control target key end

     0   :  { %v311_v0 = vmov 0.0|0.0   ;;  %vm312_vm0 = vmmov 0   ;;  %v313_v4 = vmov 0.0   ;;  %vm33_vm1 = vcmask 261120   ;;  %s416_s1 = inlined_call_operand.vmem [shape: f32[32,128], index: 1, kind: input, shape index: {}]   ;;  %s417_s3 = inlined_call_operand.vmem [shape: f32[128,1], index: 3, kind: input, shape index: {}]   ;;  %s418_s0 = inlined_call_operand.vmem [shape: f32[8,32], index: 0, kind: input, shape index: {}]   ;;  %s419_s2 = inlined_call_operand.vmem [shape: f32[1,128], index: 2, kind: input, shape index: {}]   ;;  %s420_s4 = inlined_call_operand.<no memory space> [shape: f32[1], index: 4, kind: input, shape index: {}]   ;;  %s421_s5 = inlined_call_operand.vmem [shape: f32[8,1], index: 5, kind: output, shape index: {}]  }
   0x1   :  { %276 = vmatprep.subr.bf16.mxu0 %v311_v0  ;;  %v22_v1 = vld [vmem:[%s416_s1] sm:$0xff]  ;;  %v23_v2 = vld [vmem:[%s416_s1 + $0x8] sm:$0xff]  ;;  %v24_v3 = vld [vmem:[%s416_s1 + $0x10] sm:$0xff]  ;;  %238 = vmatprep.mubr.msk.f32.mxu0 %vm312_vm0, %v313_v4  ;;  %v125_v38 = vstv %s420_s4  ;;  %vm200_vm2 = vcmask 7168  }
   0x2   :  { %v277_v5 = vpack.c.bf16 %v23_v2, %v22_v1  ;;  %v25_v6 = vld [vmem:[%s416_s1 + $0x18] sm:$0xff]  ;;  %282 = vmatprep.subr.bf16.mxu1 %v311_v0  ;;  %v108_v7 = vld [vmem:[%s417_s3] sm:$0xff]  ;;  %273 = vmatprep.mubr.msk.f32.mxu1 %vm312_vm0, %v313_v4  ;;  %v109_v8 = vld [vmem:[%s417_s3 + $0x8] sm:$0xff] }
   0x3   :  { %v110_v9 = vld [vmem:[%s417_s3 + $0x10] sm:$0xff]  ;;  %v111_v10 = vld [vmem:[%s417_s3 + $0x18] sm:$0xff]  ;;  %v280_v11 = vpack.c.bf16 %v25_v6, %v24_v3  ;;  %v283_v12 = vpack.c.bf16 %v109_v8, %v108_v7  ;;  %v112_v14 = vld [vmem:[%s417_s3 + $0x20] sm:$0xff] }
   0x4   :  { %278 = vmatpush3.bf16.msra.mxu0 %v277_v5  ;;  %v286_v13 = vpack.c.bf16 %v111_v10, %v110_v9  ;;  %v113_v15 = vld [vmem:[%s417_s3 + $0x28] sm:$0xff]  ;;  %v21_v16 = vld [vmem:[%s418_s0] sm:$0xff]  ;;  %v114_v18 = vld [vmem:[%s417_s3 + $0x30] sm:$0xff] }
   0x5   :  { %279 = vmatprep.subr.bf16.mxu0 %v311_v0  ;;  %284 = vmatpush3.bf16.msra.mxu1 %v283_v12  ;;  %v289_v17 = vpack.c.bf16 %v113_v15, %v112_v14  ;;  %v115_v19 = vld [vmem:[%s417_s3 + $0x38] sm:$0xff]  ;;  %v116_v21 = vld [vmem:[%s417_s3 + $0x40] sm:$0xff]  ;;  %v117_v22 = vld [vmem:[%s417_s3 + $0x48] sm:$0xff] }
   0x6   :  { %285 = vmatprep.subr.bf16.mxu1 %v311_v0  ;;  %v292_v20 = vpack.c.bf16 %v115_v19, %v114_v18  ;;  %v295_v23 = vpack.c.bf16 %v117_v22, %v116_v21  ;;  %v118_v24 = vld [vmem:[%s417_s3 + $0x50] sm:$0xff]  ;;  %v119_v25 = vld [vmem:[%s417_s3 + $0x58] sm:$0xff]  ;;  %v120_v27 = vld [vmem:[%s417_s3 + $0x60] sm:$0xff] }
   0x7   :  { %v298_v26 = vpack.c.bf16 %v119_v25, %v118_v24  ;;  %v121_v28 = vld [vmem:[%s417_s3 + $0x68] sm:$0xff]  ;;  %v122_v30 = vld [vmem:[%s417_s3 + $0x70] sm:$0xff]  ;;  %v123_v31 = vld [vmem:[%s417_s3 + $0x78] sm:$0xff] }
   0x8   :  { %281 = vmatpush3.bf16.msra.mxu0 %v280_v11  ;;  %v301_v29 = vpack.c.bf16 %v121_v28, %v120_v27  ;;  %v304_v32 = vpack.c.bf16 %v123_v31, %v122_v30  ;;  %v206_v33 = vld [vmem:[%s419_s2] ss:$0 sm:$0xff] }
   0x9   :  { %287 = vmatpush3.bf16.msra.mxu1 %v286_v13 }
   0xa   :  { %288 = vmatprep.subr.bf16.mxu1 %v311_v0 }
   0xb   :  { %239 = vmatmul.mubr.msk.f32.vlgmr.msra.gmra.mrb[0].mxu0 %vm33_vm1, %v21_v16 }
   0xd   :  { %290 = vmatpush3.bf16.msra.mxu1 %v289_v17 }
   0xe   :  { %291 = vmatprep.subr.bf16.mxu1 %v311_v0 }
  0x11   :  { %293 = vmatpush3.bf16.msra.mxu1 %v292_v20 }
  0x12   :  { %294 = vmatprep.subr.bf16.mxu1 %v311_v0 }
  0x15   :  { %296 = vmatpush3.bf16.msra.mxu1 %v295_v23 }
  0x16   :  { %297 = vmatprep.subr.bf16.mxu1 %v311_v0 }
  0x19   :  { %299 = vmatpush3.bf16.msra.mxu1 %v298_v26 }
  0x1a   :  { %300 = vmatprep.subr.bf16.mxu1 %v311_v0 }
  0x1d   :  { %302 = vmatpush3.bf16.msra.mxu1 %v301_v29 }
  0x1e   :  { %303 = vmatprep.subr.bf16.mxu1 %v311_v0 }
  0x21   :  { %305 = vmatpush3.bf16.msra.mxu1 %v304_v32 }
  0xde   :  { %v103_v34 = vpop.f32.mrb[0].mxu0 }
  0xdf   :  { %v104_v35 = vadd.f32 %v206_v33, %v103_v34  ;;  %v240_v36 = vpop.f32.mrb[1].mxu0 }
  0xe1   :  { %v107_v37 = vmax.f32 %v104_v35, 0.0 }
  0xe3   :  { %274 = vmatmul.mubr.f32.vlgmr.msra.gmra.mrb[0].mxu1 %v107_v37 }
 0x1b6   :  { %v192_v39 = vpop.f32.mrb[0].mxu1 }
 0x1b7   :  { %v193_v40 = vadd.f32 %v192_v39, %v125_v38  ;;  %v275_v41 = vpop.f32.mrb[1].mxu1 }
 0x1b9   :  { %v196_v42 = vmul.f32 0.5, %v193_v40 }
 0x1bb   :  { %309 = vtanh.f32 %v196_v42 }
 0x1c5   :  { %v310_v43 = vpop.eup %309 }
 0x1c6   :  { %v198_v44 = vadd.f32 1.0, %v310_v43 }
 0x1c8   :  { %v199_v45 = vmul.f32 0.5, %v198_v44 }
 0x1ca   :  { %201 = vst.msk [vmem:[%s421_s5] sm:$0xff] %vm200_vm2, %v199_v45 }

</bundles_post_ra>
